<compile_context>
chip_gen: v7x
topology: tpu7x:2x2x1
jax: 0.10.0
libtpu: 0.0.40
codegen_flags: <defaults>
</compile_context>

<pallas_src>
import jax
import jax.numpy as jnp
import numpy as np
from jax.experimental import pallas as pl
from jax.experimental.pallas import tpu as pltpu


def _vmem_capacity_bytes():
    """Physical VMEM of the current chip (conservative fallback = v7x 64 MiB)."""
    try:
        return int(pltpu.get_tpu_info().vmem_capacity_bytes)
    except Exception:
        return 64 * 1024 * 1024


# ---------------------------------------------------------------------------
# Fused kernel: MaxFusion over agents + fused (cls|reg) 1x1-conv head.
# Grid = (B, n_spatial_tiles, n_max_agents); agent axis last ('arbitrary').
# ---------------------------------------------------------------------------
def _fused_maxfusion_heads_kernel(cum_ref,                 # scalar prefetch
                                  x_ref, w_ref, b_ref,     # inputs
                                  out_ref,                 # output
                                  acc_ref):                # VMEM scratch
    b = pl.program_id(0)
    a = pl.program_id(2)
    n_agents = cum_ref[b + 1] - cum_ref[b]

    # First agent of this (sample, spatial tile): initialize accumulator.
    @pl.when(a == 0)
    def _():
        acc_ref[...] = x_ref[0]

    # Subsequent *active* agents: masked max accumulate.
    @pl.when(jnp.logical_and(a > 0, a < n_agents))
    def _():
        acc_ref[...] = jnp.maximum(acc_ref[...], x_ref[0])

    # Last agent grid step: one fused (cls+reg) 1x1-conv MXU matmul on the
    # fused tile in VMEM, lane-broadcast bias add, lane-dense NCHW store.
    @pl.when(a == pl.num_programs(2) - 1)
    def _():
        fused = acc_ref[...].astype(w_ref.dtype)           # (C, tile_hw)
        out_ref[0] = (jnp.dot(w_ref[...], fused,
                              preferred_element_type=jnp.float32)
                      + b_ref[...]).astype(out_ref.dtype)


def _pick_tile_hw(hw_pad, c, itemsize, cap_bytes, min_tiles=1):
    """Largest lane-dense (multiple of 128) tile dividing hw_pad within budget."""
    assert hw_pad % 128 == 0
    max_lanes = max(128, (cap_bytes // (itemsize * c)) // 128 * 128)
    if min_tiles > 1:
        # Guarantee >= min_tiles spatial blocks (keeps both v7x TCs busy).
        max_lanes = min(max_lanes, max(128, (hw_pad // min_tiles) // 128 * 128))
    max_lanes = min(max_lanes, hw_pad)
    for t in range(int(max_lanes), 127, -128):
        if hw_pad % t == 0:
            return t
    return 128


def fused_maxfusion_heads(x, cum, w_all, b_all, batch_size, n_max,
                          tile_hw, vmem_limit_bytes):
    """
    x:      (N_agents, C, HW_pad)  -- NCHW features, spatial flattened + lane-padded
    cum:    (B+1,) int32           -- cumulative record_len offsets
    w_all:  (out_ch, C) f32        -- concatenated [cls; reg] 1x1-conv weights
    b_all:  (out_ch, 1) f32        -- concatenated biases
    Returns (B, out_ch, HW_pad) f32.
    """
    n, c, hw_pad = x.shape
    out_ch = w_all.shape[0]
    n_s = hw_pad // tile_hw

    def x_index_map(b, s, a, cum_ref):
        # Clamp so padded (inactive) agent steps reuse the previous block index
        # -> Pallas skips the re-DMA.  Requires record_len >= 1 (asserted).
        idx = jnp.minimum(cum_ref[b] + a, cum_ref[b + 1] - 1)
        return (idx, 0, s)

    grid_spec = pltpu.PrefetchScalarGridSpec(
        num_scalar_prefetch=1,
        grid=(batch_size, n_s, n_max),
        in_specs=[
            pl.BlockSpec((1, c, tile_hw), x_index_map),
            pl.BlockSpec((out_ch, c), lambda b, s, a, cum: (0, 0)),
            pl.BlockSpec((out_ch, 1), lambda b, s, a, cum: (0, 0)),
        ],
        out_specs=pl.BlockSpec((1, out_ch, tile_hw),
                               lambda b, s, a, cum: (b, 0, s)),
        scratch_shapes=[pltpu.VMEM((c, tile_hw), x.dtype)],
    )

    return pl.pallas_call(
        _fused_maxfusion_heads_kernel,
        out_shape=jax.ShapeDtypeStruct((batch_size, out_ch, hw_pad),
                                       jnp.float32),
        grid_spec=grid_spec,
        compiler_params=pltpu.CompilerParams(
            dimension_semantics=("parallel", "parallel", "arbitrary"),
            vmem_limit_bytes=int(vmem_limit_bytes)),
    )(cum, x, w_all, b_all)


# ---------------------------------------------------------------------------
# HomoCollab forward (Pallas-backed).
# ---------------------------------------------------------------------------
def homo_collab_forward(spatial_features_nchw, record_len, params):
    """
    spatial_features_nchw: (N_agents, C, H, W)  -- encoder output (f32 or bf16)
    record_len:            python list / np array, sum == N_agents, each >= 1
    params: dict with cls/reg head weights (PyTorch Conv2d 1x1 layout, f32).
    Returns dict mimicking HomoCollab.forward output_dict.
    """
    n, c, h, w = spatial_features_nchw.shape
    record_len = np.asarray(record_len, dtype=np.int32)
    assert record_len.min() >= 1, "record_len entries must be >= 1"
    assert int(record_len.sum()) == n
    batch_size = int(record_len.shape[0])
    n_max = int(record_len.max())
    cum = jnp.asarray(np.concatenate([[0], np.cumsum(record_len)]),
                      dtype=jnp.int32)

    # backbone = identity, aligner = identity, assemble (single modality) = id.
    # Native NCHW: flatten spatial only (free, row-major view), no transpose.
    hw = h * w
    hw_pad = ((hw + 127) // 128) * 128
    x = spatial_features_nchw.reshape(n, c, hw)
    if hw_pad != hw:
        # Lane-pad HW to a multiple of 128 (unmasked stores, bounded blocks).
        # Padded lanes are never read back (sliced off the head outputs).
        x = jnp.pad(x, ((0, 0), (0, 0), (0, hw_pad - hw)))

    # PyTorch Conv2d(k=1) weight (out, in, 1, 1) -> (out, in): already the
    # correct orientation for W @ X(C, HW) -> (out, HW) == NCHW output.
    # Fuse cls + reg into one weight/bias so the kernel does a single,
    # sublane-full MXU matmul per spatial tile.
    wc = params["cls_w"].reshape(params["cls_w"].shape[0], c)
    wr = params["reg_w"].reshape(params["reg_w"].shape[0], c)
    a_cls, a_reg = wc.shape[0], wr.shape[0]
    out_ch = a_cls + a_reg
    w_all = jnp.concatenate([wc, wr], axis=0).astype(jnp.float32)
    b_all = jnp.concatenate([params["cls_b"], params["reg_b"]]
                            ).reshape(out_ch, 1).astype(jnp.float32)

    # Tile selection: byte cap per x block derived from physical VMEM
    # (~8 MiB on 128 MiB v5e/v6e, ~4 MiB on 64 MiB v7x); no lane-count clamp.
    itemsize = jnp.dtype(x.dtype).itemsize
    vmem_cap = _vmem_capacity_bytes()
    cap_bytes = max(2 << 20, vmem_cap // 16)
    min_tiles = 2 if (batch_size == 1 and hw_pad >= 256) else 1
    tile_hw = _pick_tile_hw(hw_pad, c, itemsize, cap_bytes, min_tiles)

    # Explicit scoped-VMEM budget: 2x x block (double-buffered) + acc scratch
    # + 2x output block + weight/bias residents, with headroom; floored at the
    # 32 MiB default and capped well below the smallest physical VMEM (v7x).
    x_block = c * tile_hw * itemsize
    need = (2 * x_block + c * tile_hw * itemsize
            + 2 * out_ch * tile_hw * 4
            + 2 * out_ch * c * 4 + 2 * 8 * 128 * 4)
    vmem_limit = min(max(need * 5 // 4 + (2 << 20), 32 << 20),
                     vmem_cap * 3 // 4)

    out = fused_maxfusion_heads(x, cum, w_all, b_all, batch_size, n_max,
                                tile_hw, vmem_limit)

    out = out[:, :, :hw].reshape(batch_size, out_ch, h, w)   # NCHW
    cls_preds = out[:, :a_cls]
    reg_preds = out[:, a_cls:]

    return {
        "pyramid": "collab",
        "cls_preds": cls_preds,
        "reg_preds": reg_preds,
        "dir_preds": None,           # no dir_args in this config
        "occ_single_list": [],       # non-pyramid fusion -> empty occ list
    }


# ---------------------------------------------------------------------------
# Pure-JAX reference for verification.
# ---------------------------------------------------------------------------
def reference_forward(spatial_features_nchw, record_len, params):
    record_len = np.asarray(record_len)
    cum = np.concatenate([[0], np.cumsum(record_len)])
    x = spatial_features_nchw.astype(jnp.float32)
    fused = jnp.stack([
        jnp.max(x[cum[b]:cum[b + 1]], axis=0)
        for b in range(len(record_len))
    ])  # (B, C, H, W)
    c = fused.shape[1]
    wc = params["cls_w"].reshape(-1, c)
    wr = params["reg_w"].reshape(-1, c)
    cls = jnp.einsum("bchw,ac->bahw", fused, wc) + params["cls_b"][None, :, None, None]
    reg = jnp.einsum("bchw,ac->bahw", fused, wr) + params["reg_b"][None, :, None, None]
    return cls, reg


if __name__ == "__main__":
    def run_case(seed, record_len, C, H, W, A, dtype, atol):
        key = jax.random.PRNGKey(seed)
        k_feat, k_wc, k_bc, k_wr, k_br = jax.random.split(key, 5)
        N = int(np.sum(record_len))
        B = len(record_len)
        feats = jax.random.normal(k_feat, (N, C, H, W),
                                  dtype=jnp.float32).astype(dtype)
        params = {
            # PyTorch Conv2d(k=1) weight layout: (out_ch, in_ch, 1, 1)
            "cls_w": 0.1 * jax.random.normal(k_wc, (A, C, 1, 1), dtype=jnp.float32),
            "cls_b": 0.01 * jax.random.normal(k_bc, (A,), dtype=jnp.float32),
            "reg_w": 0.1 * jax.random.normal(k_wr, (7 * A, C, 1, 1), dtype=jnp.float32),
            "reg_b": 0.01 * jax.random.normal(k_br, (7 * A,), dtype=jnp.float32),
        }
        out = homo_collab_forward(feats, record_len, params)
        jax.block_until_ready(out["cls_preds"])
        jax.block_until_ready(out["reg_preds"])
        ref_cls, ref_reg = reference_forward(feats, record_len, params)
        assert out["cls_preds"].shape == (B, A, H, W)
        assert out["reg_preds"].shape == (B, 7 * A, H, W)
        assert jnp.allclose(out["cls_preds"], ref_cls, atol=atol, rtol=1e-3), \
            float(jnp.max(jnp.abs(out["cls_preds"] - ref_cls)))
        assert jnp.allclose(out["reg_preds"], ref_reg, atol=atol, rtol=1e-3), \
            float(jnp.max(jnp.abs(out["reg_preds"] - ref_reg)))

    # Baseline: B=2, lane-aligned HW, single spatial tile per sample.
    run_case(0, [2, 1], C=32, H=16, W=16, A=2, dtype=jnp.float32, atol=1e-4)
    # B=1: forces >=2 spatial tiles so both v7x TensorCores get parallel blocks.
    run_case(1, [3], C=32, H=16, W=16, A=2, dtype=jnp.float32, atol=1e-4)
    # Non-128-multiple HW: exercised via wrapper-side lane padding (144 -> 256).
    run_case(2, [2, 1], C=32, H=12, W=12, A=2, dtype=jnp.float32, atol=1e-4)
    # bf16 feature stream (halves the HBM read the kernel is bound by).
    run_case(3, [2, 1], C=32, H=16, W=16, A=2, dtype=jnp.bfloat16, atol=1e-3)

    print("KERNEL_OK")
</pallas_src>

<mosaic_0001>
module attributes {stable_mosaic.version = 11 : i64} {
  func.func @_fused_maxfusion_heads_kernel(%arg0: i32, %arg1: i32, %arg2: i32, %arg3: memref<3xi32, #tpu.memory_space<smem>>, %arg4: memref<1x32x256xf32, #tpu.memory_space<vmem>>, %arg5: memref<16x32xf32, #tpu.memory_space<vmem>>, %arg6: memref<16x1xf32, #tpu.memory_space<vmem>>, %arg7: memref<1x16x256xf32, #tpu.memory_space<vmem>>, %arg8: memref<32x256xf32, #tpu.memory_space<vmem>>) attributes {dimension_semantics = [#tpu.dimension_semantics<parallel>, #tpu.dimension_semantics<parallel>, #tpu.dimension_semantics<arbitrary>], iteration_bounds = array<i64: 2, 1, 2>, scalar_prefetch = 1 : i64, scratch_operands = 1 : i64, tpu.core_type = #tpu.core_type<tc>, window_params = [{transform_indices = @transform_0, window_bounds = array<i64: 1, 32, 256>}, {pipeline_mode = #tpu.pipeline_mode<synchronous>, transform_indices = @transform_1, window_bounds = array<i64: 16, 32>}, {pipeline_mode = #tpu.pipeline_mode<synchronous>, transform_indices = @transform_2, window_bounds = array<i64: 16, 1>}, {transform_indices = @transform_3, window_bounds = array<i64: 1, 16, 256>}]} {
    %c1_i32 = arith.constant 1 : i32
    %0 = arith.addi %arg0, %c1_i32 : i32
    %1 = arith.index_cast %0 : i32 to index
    %2 = memref.load %arg3[%1] : memref<3xi32, #tpu.memory_space<smem>>
    %3 = arith.index_cast %arg0 : i32 to index
    %4 = memref.load %arg3[%3] : memref<3xi32, #tpu.memory_space<smem>>
    %5 = arith.subi %2, %4 : i32
    %c0_i32 = arith.constant 0 : i32
    %6 = arith.cmpi eq, %arg2, %c0_i32 : i32
    %7 = arith.extui %6 : i1 to i32
    %c0_i32_0 = arith.constant 0 : i32
    %8 = arith.cmpi ne, %7, %c0_i32_0 : i32
    scf.if %8 {
      %c0 = arith.constant 0 : index
      %c0_5 = arith.constant 0 : index
      %c0_6 = arith.constant 0 : index
      %17 = vector.load %arg4[%c0, %c0_5, %c0_6] : memref<1x32x256xf32, #tpu.memory_space<vmem>>, vector<1x32x256xf32>
      %18 = vector.shape_cast %17 : vector<1x32x256xf32> to vector<32x256xf32>
      %c0_7 = arith.constant 0 : index
      %c0_8 = arith.constant 0 : index
      %19 = vector.load %arg8[%c0_7, %c0_8] : memref<32x256xf32, #tpu.memory_space<vmem>>, vector<32x256xf32>
      tpu.vector_store %arg8[%c0_7, %c0_8], %18 {strides = array<i32>} : memref<32x256xf32, #tpu.memory_space<vmem>>, vector<32x256xf32>,
    } else {
    }
    %c0_i32_1 = arith.constant 0 : i32
    %9 = arith.cmpi sgt, %arg2, %c0_i32_1 : i32
    %10 = arith.cmpi slt, %arg2, %5 : i32
    %11 = arith.andi %9, %10 : i1
    %12 = arith.extui %11 : i1 to i32
    %c0_i32_2 = arith.constant 0 : i32
    %13 = arith.cmpi ne, %12, %c0_i32_2 : i32
    scf.if %13 {
      %c0 = arith.constant 0 : index
      %c0_5 = arith.constant 0 : index
      %17 = vector.load %arg8[%c0, %c0_5] : memref<32x256xf32, #tpu.memory_space<vmem>>, vector<32x256xf32>
      %c0_6 = arith.constant 0 : index
      %c0_7 = arith.constant 0 : index
      %c0_8 = arith.constant 0 : index
      %18 = vector.load %arg4[%c0_6, %c0_7, %c0_8] : memref<1x32x256xf32, #tpu.memory_space<vmem>>, vector<1x32x256xf32>
      %19 = vector.shape_cast %18 : vector<1x32x256xf32> to vector<32x256xf32>
      %20 = arith.maximumf %17, %19 : vector<32x256xf32>
      %c0_9 = arith.constant 0 : index
      %c0_10 = arith.constant 0 : index
      %21 = vector.load %arg8[%c0_9, %c0_10] : memref<32x256xf32, #tpu.memory_space<vmem>>, vector<32x256xf32>
      tpu.vector_store %arg8[%c0_9, %c0_10], %20 {strides = array<i32>} : memref<32x256xf32, #tpu.memory_space<vmem>>, vector<32x256xf32>,
    } else {
    }
    %c1_i32_3 = arith.constant 1 : i32
    %14 = arith.cmpi eq, %arg2, %c1_i32_3 : i32
    %15 = arith.extui %14 : i1 to i32
    %c0_i32_4 = arith.constant 0 : i32
    %16 = arith.cmpi ne, %15, %c0_i32_4 : i32
    scf.if %16 {
      %c0 = arith.constant 0 : index
      %c0_5 = arith.constant 0 : index
      %17 = vector.load %arg8[%c0, %c0_5] : memref<32x256xf32, #tpu.memory_space<vmem>>, vector<32x256xf32>
      %c0_6 = arith.constant 0 : index
      %c0_7 = arith.constant 0 : index
      %18 = vector.load %arg5[%c0_6, %c0_7] : memref<16x32xf32, #tpu.memory_space<vmem>>, vector<16x32xf32>
      %cst = arith.constant dense<0.000000e+00> : vector<16x256xf32>
      %19 = tpu.matmul %18, %17, %cst {dimension_numbers = #tpu.dot_dimension_numbers<[1], [0], [0], [1], [0, 0, 1, 1], [], []>} : vector<16x32xf32>, vector<32x256xf32>, vector<16x256xf32> -> vector<16x256xf32>
      %c0_8 = arith.constant 0 : index
      %c0_9 = arith.constant 0 : index
      %20 = vector.load %arg6[%c0_8, %c0_9] : memref<16x1xf32, #tpu.memory_space<vmem>>, vector<16x1xf32>
      %21 = vector.broadcast %20 : vector<16x1xf32> to vector<16x256xf32>
      %22 = arith.addf %19, %21 : vector<16x256xf32>
      %c0_10 = arith.constant 0 : index
      %c0_11 = arith.constant 0 : index
      %c0_12 = arith.constant 0 : index
      %23 = vector.load %arg7[%c0_10, %c0_11, %c0_12] : memref<1x16x256xf32, #tpu.memory_space<vmem>>, vector<1x16x256xf32>
      %24 = vector.shape_cast %23 : vector<1x16x256xf32> to vector<16x256xf32>
      %25 = vector.shape_cast %22 : vector<16x256xf32> to vector<1x16x256xf32>
      tpu.vector_store %arg7[%c0_10, %c0_11, %c0_12], %25 {strides = array<i32>} : memref<1x16x256xf32, #tpu.memory_space<vmem>>, vector<1x16x256xf32>,
    } else {
    }
    return
  }
  func.func @transform_0(%arg0: i32, %arg1: i32, %arg2: i32, %arg3: memref<3xi32, #tpu.memory_space<smem>>) -> (i32, i32, i32) {
    %0 = arith.index_cast %arg0 : i32 to index
    %1 = memref.load %arg3[%0] : memref<3xi32, #tpu.memory_space<smem>>
    %2 = arith.addi %1, %arg2 : i32
    %c1_i32 = arith.constant 1 : i32
    %3 = arith.addi %arg0, %c1_i32 : i32
    %4 = arith.index_cast %3 : i32 to index
    %5 = memref.load %arg3[%4] : memref<3xi32, #tpu.memory_space<smem>>
    %c1_i32_0 = arith.constant 1 : i32
    %6 = arith.subi %5, %c1_i32_0 : i32
    %7 = arith.minsi %2, %6 : i32
    %c0_i32 = arith.constant 0 : i32
    %c0_i32_1 = arith.constant 0 : i32
    return %7, %c0_i32, %arg1 : i32, i32, i32
  }
  func.func @transform_1(%arg0: i32, %arg1: i32, %arg2: i32, %arg3: memref<3xi32, #tpu.memory_space<smem>>) -> (i32, i32) {
    %c0_i32 = arith.constant 0 : i32
    %c0_i32_0 = arith.constant 0 : i32
    %c0_i32_1 = arith.constant 0 : i32
    return %c0_i32, %c0_i32_0 : i32, i32
  }
  func.func @transform_2(%arg0: i32, %arg1: i32, %arg2: i32, %arg3: memref<3xi32, #tpu.memory_space<smem>>) -> (i32, i32) {
    %c0_i32 = arith.constant 0 : i32
    %c0_i32_0 = arith.constant 0 : i32
    %c0_i32_1 = arith.constant 0 : i32
    return %c0_i32, %c0_i32_0 : i32, i32
  }
  func.func @transform_3(%arg0: i32, %arg1: i32, %arg2: i32, %arg3: memref<3xi32, #tpu.memory_space<smem>>) -> (i32, i32, i32) {
    %c0_i32 = arith.constant 0 : i32
    %c0_i32_0 = arith.constant 0 : i32
    return %arg0, %c0_i32, %arg1 : i32, i32, i32
  }
}

</mosaic_0001>

<bundles_post_ra>
// kernel: tpu_custom_call.1
= control target key start
LH: loop header
LB: loop body
LE: loop exit
PB: predicated region body
PF: predicated region fallthrough
CT: control target
= control target key end

     0   :  { %s1199_s0 = inlined_call_operand.vmem [shape: s32[3], index: 0, kind: input, shape index: {}]   ;;  %s1200_s1 = inlined_call_operand.hbm [shape: f32[3,32,256], index: 1, kind: input, shape index: {}]   ;;  %s1201_s2 = inlined_call_operand.vmem [shape: f32[16,32], index: 2, kind: input, shape index: {}]   ;;  %s1202_s3 = inlined_call_operand.vmem [shape: f32[16,1], index: 3, kind: input, shape index: {}]   ;;  %s1203_s4 = inlined_call_operand.hbm [shape: f32[2,16,256], index: 4, kind: output, shape index: {}]  }
   0x1   :  { %s9_s17 = sshll.u32 %s1199_s0, 4  ;;  %s10_s17 = int_to_ptr.vmem [resolvable:$true] %s9_s17 }
   0x2   :  { %s690_s18 = scalar_lea.vmem %s10_s17, 16  ;;  %p695_p1 = scmp.lt.s32.totalorder %s10_s17, %s10_s17 }
   0x3   :  { %p691_p0 = scmp.ne.s32.totalorder %s10_s17, %s690_s18  ;;  %p696_p2 = scmp.lt.s32.totalorder %s690_s18, %s690_s18 }
   0x5   :  { %p697_p3 = por %p696_p2, %p695_p1 }
   0x7   :  { %p698_p4 = pnand %p697_p3, %p691_p0 }
   0x9   :  { %701 = shalt.err (!%p698_p4)  }
   0xa   :  { %s858_s19 = smov [#allocation4]  }
   0xb   :  { %12 = dma.vmem_to_smem %s10_s17, 16, %s858_s19, [#allocation3] }
   0xc   :  { %804 = dma.done.wait [#allocation3], 16 }
   0xd   :  { %805 = vsyncadd [#allocation3], 4294967280 }
   0xe   :  { %14 = sfence }
   0xf   :  { %15 = vsyncpa [#allocation6], 0 }
  0x10   :  { %17 = vsyncpa [#allocation6 + $0x1], 0 }
  0x11   :  { %18 = vsyncpa [#allocation7], 0 }
  0x12   :  { %20 = vsyncpa [#allocation7 + $0x1], 0  ;;  %s895_s20 = smov 0   ;;  %s897_s0 = smov 0  }
  0x13   :  { %s899_s21 = smov 0   ;;  %s901_s22 = smov 0  }
  0x14   :  { %s903_s23 = smov 0   ;;  %s905_s24 = smov 0  }
  0x15   :  { %s907_s25 = smov 0   ;;  %s909_s26 = smov 0  }
  0x16   :  { %s911_s27 = smov 0   ;;  %s913_s28 = smov 0  }
  0x17   :  { %s915_s29 = smov 0  }
  0x18 LB: > { %1210 = sst [smem:[#allocation16_spill]] %s836_s24  ;;  %s38_s30 = sadd.s32 1, %s848_s27  ;;  %s856_s29 = sphi %s915_s29, %s26_s29   ;;  %s852_s28 = sphi %s913_s28, %s1228_s28   ;;  %s848_s27 = sphi %s911_s27, %s1235_s27   ;;  %s844_s26 = sphi %s909_s26, %s1226_s26   ;;  %s840_s25 = sphi %s907_s25, %s1234_s25   ;;  %s836_s24 = sphi %s905_s24, %s1225_s24   ;;  %s832_s23 = sphi %s903_s23, %s1233_s23   ;;  %s828_s22 = sphi %s901_s22, %s1232_s22   ;;  %s824_s21 = sphi %s899_s21, %s1231_s21   ;;  %s820_s0 = sphi %s897_s0, %s1230_s0   ;;  %s816_s20 = sphi %s895_s20, %s1229_s20  }
  0x19   : > { %1211 = sst [smem:[#allocation17_spill]] %s852_s28  ;;  %s950_s5 = sadd.s32 1, %s852_s28 }
  0x1a   : > { %p39_p5 = scmp.ge.s32.totalorder %s38_s30, 2  ;;  %s49_s6 = sld [smem:[#allocation4 + %s852_s28]] }
  0x1b   : > { %s536_s7 = sadd.s32 4294967295, %s856_s29   ;;  %s52_s8 = sld [smem:[#allocation4 + %s950_s5]] }
  0x1c   : > { %s1237_s30 = smov (%p39_p5, %s38_s30), 0  ;;  %s537_s10 = sadd.s32 4294967294, %s856_s29  }
  0x1d   : > { %1212 = sst [smem:[#allocation18_spill]] %s1237_s30  ;;  %p75_p6 = scmp.ne.s32.totalorder %s836_s24, %s832_s23 }
  0x1e   : > { %s46_s9 = scalar_select %p39_p5, %s950_s5, %s852_s28 }
  0x1f   : > { %p76_p8 = scmp.eq.s32.totalorder %s856_s29, 0  ;;  %p81_p9 = scmp.ne.s32.totalorder %s832_s23, %s828_s22 }
  0x20   : > { %p47_p7 = scmp.ge.s32.totalorder %s46_s9, 2  ;;  %s50_s11 = sadd.s32 %s848_s27, %s49_s6 }
  0x21   : > { %s538_s12 = sadd.s32 4294967295, %s52_s8  ;;  %p82_p10 = scmp.eq.s32.totalorder %s536_s7, 0 }
  0x22   : > { %s1239_s9 = smov (%p47_p7, %s46_s9), 0  ;;  %p54_p11 = scmp.lt.s32.totalorder %s50_s11, %s538_s12 }
  0x23   : > { %1213 = sst [smem:[#allocation19_spill]] %s1239_s9  ;;  %s58_s14 = sadd.s32 1, %s1239_s9 }
  0x24   : > { %s56_s13 = sld [smem:[#allocation4 + %s1239_s9]]  ;;  %p969_p12 = por %p82_p10, %p81_p9 }
  0x25   : > { %s1241_s11 = smov (!%p54_p11, %s50_s11), %s538_s12  ;;  %s59_s16 = sld [smem:[#allocation4 + %s58_s14]] }
  0x26   : > { %s1214_s15 = scalar_select %p969_p12, 1, 0 }
  0x27   : > { %s133_s17 = ssub.s32 %s852_s28, %s1239_s9  ;;  %s138_s18 = sadd.s32 1, %s824_s21 }
  0x28   : > { %p136_p13 = scmp.eq.s32.totalorder %s133_s17, 0  ;;  %p148_p0 = scmp.ne.s32.totalorder %s824_s21, %s820_s0 }
  0x29   : > { %p149_p1 = scmp.eq.s32.totalorder %s536_s7, 3  ;;  %p154_p2 = scmp.ne.s32.totalorder %s820_s0, %s816_s20 }
  0x2a   : > { %s57_s19 = sadd.s32 %s56_s13, %s1237_s30  ;;  %p155_p4 = scmp.eq.s32.totalorder %s537_s10, 3 }
  0x2b   : > { %s982_s22 = scalar_select %p136_p13, %s824_s21, %s138_s18  }
  0x2c   : > { %p984_p3 = por %p149_p1, %p148_p0  ;;  %s539_s8 = sadd.s32 4294967295, %s59_s16 }
  0x2d   : > { %p61_p5 = scmp.lt.s32.totalorder %s57_s19, %s539_s8  ;;  %p988_p7 = por %p155_p4, %p154_p2 }
  0x2e   : > { %s1215_s6 = scalar_select %p984_p3, 1, 0 }
  0x2f   : > { %s1216_s12 = scalar_select %p988_p7, 1, 0 }
  0x30   : > { %p997_p9 = por %p76_p8, %p75_p6  ;;  %s1243_s19 = smov (!%p61_p5, %s57_s19), %s539_s8 }
  0x31   : > { %s68_s10 = sadd.s32 1, %s836_s24  ;;  %s63_s13 = ssub.s32 %s1241_s11, %s1243_s19 }
  0x32   : > { %p592_p10 = scmp.lt.s32.totalorder %s856_s29, 4  ;;  %p66_p11 = scmp.eq.s32.totalorder %s63_s13, 0 }
  0x33   : > { %s181_s14 = sand.u32 1, %s836_s24   ;;  %s1249_s5 = smov (!%p997_p9, %s950_s5), 0 }
  0x34   : > { %s572_s16 = scalar_select %p997_p9, [#allocation4], [#allocation9] }
  0x35   : > { %s1007_s17 = scalar_select %p66_p11, %s836_s24, %s68_s10  }
  0x36   : > { %s573_s18 = scalar_select %p997_p9, %s852_s28, 0 }
  0x37   : > { %1218 = sst [smem:[#allocation20_spill]] %s1007_s17  ;;  %s1245_s16 = smov (!%p592_p10, %s572_s16), [#allocation11] }
  0x38   : > { %s1247_s18 = smov (!%p592_p10, %s573_s18), 0  ;;  %s542_s9 = sshll.u32 %s181_s14, 6 }
  0x39   : > { %s574_s8 = scalar_select %p997_p9, [#allocation4], [#allocation10] }
  0x3a   : > { %s186_s11 = sld [smem:[%s1245_s16 + %s1247_s18]]  ;;  %s1253_s5 = smov (!%p592_p10, %s1249_s5), 0 }
  0x3b   : > { %s1251_s8 = smov (!%p592_p10, %s574_s8), [#allocation12]  ;;  %p1029_p6 = pnand %p592_p10, %p997_p9 }
  0x3c   : > { %s189_s10 = sld [smem:[%s1251_s8 + %s1253_s5]]  ;;  %p546_p8 = scmp.ge.s32.totalorder %s856_s29, 1 }
  0x3d   : > { %p209_p13 = scmp.lt.s32.totalorder %s856_s29, 5  ;;  %s185_s18 = scalar_lea.vmem [#allocation5], %s542_s9 }
  0x3e   : > { %s201_s30 = sshll.u32 %s185_s18, 4  ;;  %s1047_s8 = scalar_lea.sflag [#allocation6], %s181_s14  ;;  %s1040_s30 = int_to_ptr.vmem [resolvable:$true] %s201_s30 }
  0x3f   : > { %p1036_p0 = pnand %p546_p8, %p209_p13  ;;  %p704_p4 = pneg %p1029_p6 }
  0x40   : > { %s187_s13 = sadd.s32 %s848_s27, %s186_s11  ;;  %s707_s24 = scalar_lea.hbm %s1200_s1, 3072 }
  0x42   : > { %s543_s28 = sadd.s32 4294967295, %s189_s10 }
  0x43   : > { %p191_p1 = scmp.lt.s32.totalorder %s187_s13, %s543_s28 }
  0x45   : > { %s1255_s13 = smov (!%p191_p1, %s187_s13), %s543_s28 }
  0x46   : > { %s558_s7 = sshll.u32 %s1255_s13, 10 }
  0x47   : > { %s1045_s5 = scalar_lea.hbm %s1200_s1, %s558_s7 }
  0x48   : > { %s702_s11 = scalar_lea.hbm %s1045_s5, 1024  ;;  %p708_p10 = scmp.lt.u32.totalorder %s1045_s5, %s1200_s1 }
  0x49   : > { %p703_p2 = scmp.ne.s32.totalorder %s1045_s5, %s702_s11  ;;  %p709_p11 = scmp.lt.u32.totalorder %s707_s24, %s702_s11 }
  0x4a   : > { %p711_p13 = scmp.lt.u32.totalorder %s702_s11, %s1045_s5 }
  0x4b   : > { %p705_p5 = pnand %p704_p4, %p703_p2  ;;  %p710_p8 = por %p709_p11, %p708_p10 }
  0x4d   : > { %p706_p9 = pneg %p705_p5  ;;  %p712_p1 = por %p711_p13, %p710_p8 }
  0x4f   : > { %p713_p7 = pnand %p712_p1, %p706_p9 }
  0x51   : > { %716 = shalt.err (!%p713_p7)
}
  0x52   : > { %s717_s14 = scalar_lea.vmem %s1040_s30, 1024  ;;  %s859_s13 = smov [#allocation5]  }
  0x53   : > { %p718_p2 = scmp.ne.s32.totalorder %s1040_s30, %s717_s14  ;;  %s722_s18 = sshll.u32 %s859_s13, 4  ;;  %s723_s18 = int_to_ptr.vmem [resolvable:$false] %s722_s18 }
  0x54   : > { %s724_s7 = scalar_lea.vmem %s723_s18, 2048  ;;  %p725_p12 = scmp.lt.s32.totalorder %s1040_s30, %s723_s18 }
  0x55   : > { %p720_p5 = pnand %p718_p2, %p704_p4  ;;  %p726_p10 = scmp.lt.s32.totalorder %s724_s7, %s717_s14 }
  0x57   : > { %p721_p3 = pneg %p720_p5  ;;  %p727_p11 = por %p726_p10, %p725_p12 }
  0x59   : > { %p728_p8 = pnand %p727_p11, %p721_p3 }
  0x5b   : > { %731 = shalt.err (!%p728_p8)
}
  0x5c   : > { %s860_s11 = smov 256   ;;  %s861_s28 = smov 16  }
  0x5d   : > { %587 = dma.hbm_to_vmem [thread:$0]  (!%p1029_p6), %s1045_s5, 1024, %s1040_s30, %s1047_s8, %s860_s11, %s860_s11, %s861_s28  }
  0x5e   : > { %213 = sbr.rel (%p1036_p0) target bundleno = 384 (0x180), region = 32  ;;  %s215_s9 = sand.u32 (!%p1036_p0), 1, %s832_s23  }
  0x5f   : > { %s547_s24 = sshll.u32 (!%p1036_p0), %s215_s9, 6  ;;  %s216_s17 = scalar_lea.sflag (!%p1036_p0), [#allocation6], %s215_s9 }
  0x60   : > { %s1078_s10 = scalar_lea.vmem (!%p1036_p0), [#allocation5], %s547_s24  ;;  %p1221_p12 = scmp.ne.s32.totalorder (!%p1036_p0), %s1214_s15, 0 }
  0x65   : > { %807 = dma.done.wait (%p1221_p12), %s216_s17, 1024  }
  0x66   : > { %809 = vsyncadd (%p1221_p12), %s216_s17, 4294966272  ;;  %s251_s30 = sadd.s32 1, %s844_s26  ;;  %s239_s19 = sand.u32 1, %s820_s0  }
  0x67   : > { %s252_s16 = sld [smem:[#allocation4 + %s251_s30]]  ;;  %s548_s8 = sshll.u32 %s239_s19, 5 }
  0x68   : > { %s253_s5 = sld [smem:[#allocation4 + %s844_s26]]  ;;  %s1089_s13 = scalar_lea.vmem [#allocation8], %s548_s8 }
  0x69   : > { %p549_p3 = scmp.ne.s32.totalorder %s840_s25, 0 }
  0x6a   : > { %v259_v0 = vld [vmem:[%s1078_s10] sm:$0xff] (!%p549_p3)  ;;  %v260_v1 = vld [vmem:[%s1078_s10 + $0x8] sm:$0xff] (!%p549_p3)  ;;  %v261_v2 = vld [vmem:[%s1078_s10 + $0x10] sm:$0xff] (!%p549_p3) }
  0x6b   : > { %258 = sbr.rel (%p549_p3) target bundleno = 114 (0x72), region = 40  ;;  %267 = vst [vmem:[#allocation2] sm:$0xff] (!%p549_p3), %v259_v0  ;;  %268 = vst [vmem:[#allocation2 + $0x8] sm:$0xff] (!%p549_p3), %v260_v1  ;;  %v262_v3 = vld [vmem:[%s1078_s10 + $0x18] sm:$0xff] (!%p549_p3)  ;;  %v263_v4 = vld [vmem:[%s1078_s10 + $0x20] sm:$0xff] (!%p549_p3) }
  0x6c   : > { %269 = vst [vmem:[#allocation2 + $0x10] sm:$0xff] (!%p549_p3), %v261_v2  ;;  %v264_v5 = vld [vmem:[%s1078_s10 + $0x28] sm:$0xff] (!%p549_p3)  ;;  %270 = vst [vmem:[#allocation2 + $0x18] sm:$0xff] (!%p549_p3), %v262_v3  ;;  %v265_v6 = vld [vmem:[%s1078_s10 + $0x30] sm:$0xff] (!%p549_p3) }
  0x6d   : > { %271 = vst [vmem:[#allocation2 + $0x20] sm:$0xff] (!%p549_p3), %v263_v4  ;;  %272 = vst [vmem:[#allocation2 + $0x28] sm:$0xff] (!%p549_p3), %v264_v5  ;;  %v266_v7 = vld [vmem:[%s1078_s10 + $0x38] sm:$0xff] (!%p549_p3) }
  0x6e   : > { %s254_s14 = ssub.s32 %s252_s16, %s253_s5  ;;  %273 = vst [vmem:[#allocation2 + $0x30] sm:$0xff] (!%p549_p3), %v265_v6  ;;  %274 = vst [vmem:[#allocation2 + $0x38] sm:$0xff] (!%p549_p3), %v266_v7 }
  0x72 PF: > { %p275_p7 = scmp.gt.s32.totalorder %s840_s25, 0  ;;  %p276_p6 = scmp.lt.s32.totalorder %s840_s25, %s254_s14 }
  0x74   : > { %p277_p0 = pnand %p276_p6, %p275_p7 }
  0x75   : > { %v281_v8 = vld [vmem:[#allocation2] sm:$0xff] (!%p277_p0)  ;;  %v282_v10 = vld [vmem:[#allocation2 + $0x8] sm:$0xff] (!%p277_p0)  ;;  %v283_v13 = vld [vmem:[#allocation2 + $0x10] sm:$0xff] (!%p277_p0) }
  0x76   : > { %280 = sbr.rel (%p277_p0) target bundleno = 126 (0x7e), region = 44  ;;  %v289_v9 = vld [vmem:[%s1078_s10] sm:$0xff] (!%p277_p0)  ;;  %v290_v12 = vld [vmem:[%s1078_s10 + $0x8] sm:$0xff] (!%p277_p0)  ;;  %v291_v14 = vld [vmem:[%s1078_s10 + $0x10] sm:$0xff] (!%p277_p0) }
  0x77   : > { %v297_v11 = vmax.f32 (!%p277_p0), %v281_v8, %v289_v9  ;;  %v298_v15 = vmax.f32 (!%p277_p0), %v282_v10, %v290_v12  ;;  %v299_v16 = vmax.f32 (!%p277_p0), %v283_v13, %v291_v14  ;;  %v284_v17 = vld [vmem:[#allocation2 + $0x18] sm:$0xff] (!%p277_p0)  ;;  %v285_v19 = vld [vmem:[#allocation2 + $0x20] sm:$0xff] (!%p277_p0)  ;;  %v286_v22 = vld [vmem:[#allocation2 + $0x28] sm:$0xff] (!%p277_p0) }
  0x78   : > { %v292_v18 = vld [vmem:[%s1078_s10 + $0x18] sm:$0xff] (!%p277_p0)  ;;  %v293_v21 = vld [vmem:[%s1078_s10 + $0x20] sm:$0xff] (!%p277_p0)  ;;  %v294_v23 = vld [vmem:[%s1078_s10 + $0x28] sm:$0xff] (!%p277_p0) }
  0x79   : > { %305 = vst [vmem:[#allocation2] sm:$0xff] (!%p277_p0), %v297_v11  ;;  %v300_v20 = vmax.f32 (!%p277_p0), %v284_v17, %v292_v18  ;;  %306 = vst [vmem:[#allocation2 + $0x8] sm:$0xff] (!%p277_p0), %v298_v15  ;;  %v301_v24 = vmax.f32 (!%p277_p0), %v285_v19, %v293_v21  ;;  %v302_v25 = vmax.f32 (!%p277_p0), %v286_v22, %v294_v23  ;;  %v287_v26 = vld [vmem:[#allocation2 + $0x30] sm:$0xff] (!%p277_p0)  ;;  %v288_v28 = vld [vmem:[#allocation2 + $0x38] sm:$0xff] (!%p277_p0) }
  0x7a   : > { %307 = vst [vmem:[#allocation2 + $0x10] sm:$0xff] (!%p277_p0), %v299_v16  ;;  %v295_v27 = vld [vmem:[%s1078_s10 + $0x30] sm:$0xff] (!%p277_p0)  ;;  %v296_v30 = vld [vmem:[%s1078_s10 + $0x38] sm:$0xff] (!%p277_p0) }
  0x7b   : > { %308 = vst [vmem:[#allocation2 + $0x18] sm:$0xff] (!%p277_p0), %v300_v20  ;;  %v303_v29 = vmax.f32 (!%p277_p0), %v287_v26, %v295_v27  ;;  %309 = vst [vmem:[#allocation2 + $0x20] sm:$0xff] (!%p277_p0), %v301_v24  ;;  %v304_v31 = vmax.f32 (!%p277_p0), %v288_v28, %v296_v30 }
  0x7c   : > { %310 = vst [vmem:[#allocation2 + $0x28] sm:$0xff] (!%p277_p0), %v302_v25 }
  0x7d   : > { %311 = vst [vmem:[#allocation2 + $0x30] sm:$0xff] %v303_v29  ;;  %312 = vst [vmem:[#allocation2 + $0x38] sm:$0xff] %v304_v31 }
  0x7e PF: > { %p550_p4 = scmp.ne.s32.totalorder %s840_s25, 1 }
  0x7f   : > { %v862_v39 = vmov (!%p550_p4), 0.0   ;;  %v863_v44 = vmov (!%p550_p4), 0   ;;  %v327_v45 = vld [vmem:[%s1202_s3] sm:$0xff] (!%p550_p4)  ;;  %v328_v47 = vld [vmem:[%s1202_s3 + $0x8] sm:$0xff] (!%p550_p4)  ;;  %vm339_vm0 = vcmask (!%p550_p4), 261120  }
  0x80   : > { %316 = sbr.rel (%p550_p4) target bundleno = 358 (0x166), region = 48  ;;  %410 = vmatprep.mubr.f32.mxu0 (!%p550_p4), %v862_v39  ;;  %416 = vmatprep.mubr.f32.mxu1 (!%p550_p4), %v862_v39  ;;  %v325_v48 = vld [vmem:[%s1201_s2] sm:$0xff] (!%p550_p4)  ;;  %v326_v49 = vld [vmem:[%s1201_s2 + $0x8] sm:$0xff] (!%p550_p4) }
  0x81   : > { %v318_v32 = vld [vmem:[#allocation2 + $0x8] sm:$0xff] (!%p550_p4)  ;;  %v317_v34 = vld [vmem:[#allocation2] sm:$0xff] (!%p550_p4)  ;;  %689 = vset.pattern.permute.xlu0 (!%p550_p4), %v863_v44 }
  0x82   : > { %v319_v36 = vld [vmem:[#allocation2 + $0x10] sm:$0xff] (!%p550_p4)  ;;  %331 = vperm.xlu0 (!%p550_p4), %689, %v327_v45  }
  0x83   : > { %v320_v33 = vld [vmem:[#allocation2 + $0x18] sm:$0xff] (!%p550_p4)  ;;  %v562_v40 = vpack.c.bf16 (!%p550_p4), %v319_v36, %v317_v34  ;;  %v321_v42 = vld [vmem:[#allocation2 + $0x20] sm:$0xff] (!%p550_p4) }
  0x84   : > { %v560_v35 = vpack.c.bf16 (!%p550_p4), %v320_v33, %v318_v32  ;;  %v322_v37 = vld [vmem:[#allocation2 + $0x28] sm:$0xff] (!%p550_p4)  ;;  %v324_v38 = vld [vmem:[#allocation2 + $0x38] sm:$0xff] (!%p550_p4)  ;;  %v323_v43 = vld [vmem:[#allocation2 + $0x30] sm:$0xff] (!%p550_p4) }
  0x85   : > { %v564_v41 = vpack.c.bf16 (!%p550_p4), %v324_v38, %v322_v37  ;;  %v566_v46 = vpack.c.bf16 (!%p550_p4), %v323_v43, %v321_v42 }
  0x86   : > { %561 = vmatprep.subr.bf16.mxu0 (!%p550_p4), %v560_v35  ;;  %568 = vmatprep.subr.bf16.mxu1 (!%p550_p4), %v560_v35 }
  0x87   : > { %563 = vmatpush1.bf16.msra.mxu0 %v562_v40  ;;  %570 = vmatpush1.bf16.msra.mxu1 %v562_v40 }
  0x88   : > { %565 = vmatprep.subr.bf16.mxu0 %v564_v41  ;;  %569 = vmatprep.subr.bf16.mxu1 %v564_v41 }
  0x89   : > { %336 = vperm.xlu0 %689, %v328_v47  }
  0x8b   : > { %567 = vmatpush1.bf16.msra.mxu0 %v566_v46  ;;  %571 = vmatpush1.bf16.msra.mxu1 %v566_v46 }
  0x8e   : > { %551 = vmatmul.mubr.msk.f32.vlgmr.msra.gmra.mrb[0].mxu0 %vm339_vm0, %v325_v48  ;;  %552 = vmatmul.mubr.msk.f32.vlgmr.msra.gmra.mrb[0].mxu1 %vm339_vm0, %v326_v49 }
 0x101   : > { %v332_v50 = vpop.permute.xlu0 %331 }
 0x108   : > { %v337_v51 = vpop.permute.xlu0 %336 }
 0x161   : > { %v412_v52 = vpop.f32.mrb[0].mxu0  ;;  %v418_v53 = vpop.f32.mrb[0].mxu1 }
 0x162   : > { %v413_v54 = vadd.f32 %v412_v52, %v332_v50  ;;  %v419_v55 = vadd.f32 %v418_v53, %v337_v51  ;;  %v414_v56 = vpop.f32.mrb[1].mxu0  ;;  %v420_v57 = vpop.f32.mrb[1].mxu1 }
 0x163   : > { %v415_v58 = vadd.f32 %v414_v56, %v332_v50  ;;  %v421_v59 = vadd.f32 %v420_v57, %v337_v51 }
 0x164   : > { %423 = vst [vmem:[%s1089_s13] sm:$0xff] %v413_v54  ;;  %425 = vst [vmem:[%s1089_s13 + $0x10] sm:$0xff] %v419_v55 }
 0x165   : > { %424 = vst [vmem:[%s1089_s13 + $0x8] sm:$0xff] %v415_v58  ;;  %426 = vst [vmem:[%s1089_s13 + $0x18] sm:$0xff] %v421_v59 }
 0x166 PF: > { %s559_s17 = sshll.u32 %s844_s26, 9  ;;  %s443_s5 = sshll.u32 %s1089_s13, 4  ;;  %s1134_s5 = int_to_ptr.vmem [resolvable:$true] %s443_s5 }
 0x167   : > { %s1131_s16 = scalar_lea.hbm %s1203_s4, %s559_s17  ;;  %s1138_s8 = scalar_lea.sflag [#allocation7], %s239_s19 }
 0x168   : > { %s732_s14 = scalar_lea.vmem %s1134_s5, 512  ;;  %p1222_p13 = scmp.ne.s32.totalorder %s1215_s6, 0 }
 0x169   : > { %p733_p9 = scmp.ne.s32.totalorder %s1134_s5, %s732_s14  ;;  %s864_s26 = smov [#allocation8]  }
 0x16a   : > { %s736_s25 = sshll.u32 %s864_s26, 4  ;;  %s737_s25 = int_to_ptr.vmem [resolvable:$false] %s736_s25 }
 0x16b   : > { %p734_p1 = pnand %p733_p9, %p1222_p13  ;;  %s738_s15 = scalar_lea.vmem %s737_s25, 1024 }
 0x16c   : > { %p739_p5 = scmp.lt.s32.totalorder %s1134_s5, %s737_s25  ;;  %p740_p10 = scmp.lt.s32.totalorder %s738_s15, %s732_s14 }
 0x16d   : > { %p735_p2 = pneg %p734_p1 }
 0x16e   : > { %p741_p11 = por %p740_p10, %p739_p5 }
 0x170   : > { %p742_p8 = pnand %p741_p11, %p735_p2 }
 0x172   : > { %745 = shalt.err (!%p742_p8)
}
 0x173   : > { %s746_s19 = scalar_lea.hbm %s1131_s16, 512  ;;  %s750_s7 = scalar_lea.hbm %s1203_s4, 1024 }
 0x174   : > { %p747_p12 = scmp.ne.s32.totalorder %s1131_s16, %s746_s19  ;;  %p751_p6 = scmp.lt.u32.totalorder %s1131_s16, %s1203_s4 }
 0x175   : > { %p752_p0 = scmp.lt.u32.totalorder %s750_s7, %s746_s19  ;;  %p754_p9 = scmp.lt.u32.totalorder %s746_s19, %s1131_s16 }
 0x176   : > { %p748_p3 = pnand %p747_p12, %p1222_p13 }
 0x177   : > { %p753_p4 = por %p752_p0, %p751_p6 }
 0x178   : > { %p749_p7 = pneg %p748_p3 }
 0x179   : > { %p755_p1 = por %p754_p9, %p753_p4 }
 0x17b   : > { %p756_p2 = pnand %p755_p1, %p749_p7 }
 0x17d   : > { %759 = shalt.err (!%p756_p2)
}
 0x17e   : > { %s865_s9 = smov 256   ;;  %s866_s24 = smov 16  }
 0x17f   : > { %578 = dma.vmem_to_hbm [thread:$0]  (%p1222_p13), %s1134_s5, 512, %s1131_s16, %s1138_s8, %s865_s9, %s865_s9, %s866_s24  }
 0x180 PF: > { %p593_p5 = scmp.ge.s32.totalorder %s856_s29, 2  ;;  %s458_s17 = sand.u32 1, %s816_s20  }
 0x181   : > { %p1223_p10 = scmp.ne.s32.totalorder %s1216_s12, 0  ;;  %s459_s10 = scalar_lea.sflag [#allocation7], %s458_s17 }
 0x183   : > { %p589_p11 = pnand %p593_p5, %p1223_p10 }
 0x185   : > { %811 = dma.done.wait (!%p589_p11), %s459_s10, 512  }
 0x186   : > { %813 = vsyncadd (!%p589_p11), %s459_s10, 4294966784  ;;  %s26_s29 = sadd.s32 1, %s856_s29   ;;  %s1224_s6 = sld [smem:[#allocation16_spill]] }
 0x187   : > { %p23_p8 = scmp.ge.s32.totalorder %s26_s29, 6   ;;  %s1225_s24 = sld [smem:[#allocation20_spill]] }
 0x188   : > { %s1226_s26 = sld [smem:[#allocation17_spill]]  ;;  %s1227_s30 = sld [smem:[#allocation18_spill]] }
 0x189   : > { %s1228_s28 = sld [smem:[#allocation19_spill]]  ;;  %s1229_s20 = smov %s820_s0 }
 0x18a   : > { %s1230_s0 = smov %s824_s21  ;;  %s1231_s21 = smov %s982_s22 }
 0x18b   : > { %s1232_s22 = smov %s832_s23  ;;  %s1234_s25 = smov %s848_s27 }
 0x18c   : > { %s1233_s23 = smov %s1224_s6  ;;  %25 = sbr.rel (!%p23_p8) target bundleno = 24 (0x18), region = 89 }
 0x18e   : > { %s1235_s27 = smov %s1227_s30 }
 0x193   :  { %464 = vsyncpa [#allocation6], 1 }
 0x194   :  { %466 = vsyncpa [#allocation6 + $0x1], 1 }
 0x195   :  { %467 = vsyncpa [#allocation7], 1 }
 0x196   :  { %469 = vsyncpa [#allocation7 + $0x1], 1 }

</bundles_post_ra>
